<compile_context>
chip_gen: v7x
topology: tpu7x:2x2x1
jax: 0.10.0
libtpu: 0.0.40
codegen_flags: <defaults>
</compile_context>

<pallas_src>
import functools

import jax
import jax.numpy as jnp
from jax.experimental import pallas as pl
from jax.experimental.pallas import tpu as pltpu


def _uniform_sample_kernel(mind_ref, maxd_ref, out_ref, *, sample_count,
                           max_disp, out_dtype):
    # mind_ref / maxd_ref : (1, 1, tH, Wk) float32
    # out_ref             : (1, S+2, tH, Wk) out_dtype
    mind = mind_ref[0, 0]
    maxd = maxd_ref[0, 0]

    mind1 = jnp.minimum(mind, maxd)
    maxd1 = jnp.maximum(mind, maxd)

    sc = jnp.float32(sample_count)
    md = jnp.float32(max_disp)
    inv_sc1 = float(1.0 / (sample_count + 1.0))  # constant reciprocal, no vdiv

    min_disparity = jnp.clip(
        mind1 - jnp.maximum(sc - maxd1 + mind1, 0.0) * 0.5, 0.0, md)
    max_disparity = jnp.clip(
        maxd1 + jnp.maximum(sc - maxd1 + min_disparity, 0.0), 0.0, md)
    multiplier = (max_disparity - min_disparity) * inv_sc1

    def cast(x):
        # torch .long(): truncation toward zero (values are >= 0 here).
        x = x.astype(jnp.int32)
        return x if out_dtype == jnp.dtype(jnp.int32) else x.astype(out_dtype)

    # Per-plane writes (no S-plane iota / no materialized `sampled` tensor):
    # each plane is a couple of VPU ops on a (tH, Wk) slab; the kernel is
    # entirely write-back bound, so compute is free filler.
    out_ref[0, 0] = cast(jnp.floor(min_disparity))
    for s in range(sample_count):
        out_ref[0, s + 1] = cast(min_disparity + multiplier * jnp.float32(s + 1))
    out_ref[0, sample_count + 1] = cast(jnp.ceil(max_disparity))


def _spatial_layout(H, W):
    """Lane-dense layout: returns (Hk, Wk, n_pad, mode).

    mode: 'direct'  -> use (H, W) as-is (W already a multiple of 128)
          'repack'  -> pure reshape of the flattened spatial extent
          'pad'     -> flatten, zero-pad to a multiple of 128, reshape
    Wk is capped at 512 so per-plane slabs stay a handful of vregs.
    """
    n = H * W
    if W % 128 == 0:
        return H, W, n, "direct"
    n_pad = n if n % 128 == 0 else ((n + 127) // 128) * 128
    Wk = 128
    for cand in range(512, 127, -128):
        if n_pad % cand == 0:
            Wk = cand
            break
    return n_pad // Wk, Wk, n_pad, ("repack" if n_pad == n else "pad")


def _choose_tile_h(rows, lanes, sample_count, batch, out_itemsize=4,
                   target_bytes=8 * 1024 * 1024, min_mult=8):
    """Pick a row tile such that:
      * one block set (2 f32 inputs + S+2 output planes) is ~target_bytes, so
        the double-buffered footprint (~2x) stays well inside the scoped-VMEM
        limit on every generation (including v7x's 64 MiB physical VMEM);
      * it prefers an even divisor of the row extent (no ragged last block);
      * when batch == 1 there are still >= 2 grid steps (v7x megacore).
    """
    bytes_per_row = (2 * 4 + (sample_count + 2) * out_itemsize) * lanes
    th_cap = (target_bytes // max(bytes_per_row, 1)) // min_mult * min_mult
    th_cap = max(min_mult, th_cap)

    if th_cap >= rows:
        if batch >= 2 or rows < 2 * min_mult:
            return rows  # full row extent is always a legal block shape
        # batch == 1 and a single row tile would idle one v7x TensorCore: split.
        th_cap = max(min_mult, ((rows + 1) // 2) // min_mult * min_mult)

    # Prefer an even division of the row extent (but never shrink below ~half
    # of the target -- a slightly ragged last tile beats tiny tiles).
    floor_th = max(min_mult, (th_cap // 2 // min_mult) * min_mult)
    for th in range(th_cap, floor_th - 1, -min_mult):
        if rows % th == 0:
            return th
    return th_cap  # ragged last tile (Pallas clips the writeback)


def uniform_sample(mindisp, maxdisp, sample_count, *, max_disp, min_disp=0,
                   tile_h=None, out_dtype=jnp.int32,
                   target_block_bytes=8 * 1024 * 1024,
                   vmem_limit_bytes=32 * 1024 * 1024):
    """Pallas implementation of deepPruner.uniformSample.forward.

    mindisp, maxdisp: (B, 1, H, W) float32. sample_count: python int (static).
    Returns (B, sample_count + 2, H, W) with dtype `out_dtype` (default int32;
    pass int16/uint8 to halve/quarter HBM writeback when max_disp fits).
    """
    del min_disp  # stored by the torch module but never used in forward
    B, C, H, W = mindisp.shape
    assert C == 1 and maxdisp.shape == mindisp.shape
    S = int(sample_count)

    out_dtype = jnp.dtype(out_dtype)
    if out_dtype != jnp.dtype(jnp.int32):
        # Narrow write-back is only valid if all clipped values fit the dtype.
        assert 0 <= max_disp <= jnp.iinfo(out_dtype).max, (
            f"max_disp={max_disp} does not fit output dtype {out_dtype}")
    out_itemsize = out_dtype.itemsize
    # Sublane multiple required by the narrowest array in the block set
    # (f32/i32 -> 8, i16 -> 16, i8/u8 -> 32).
    min_mult = max(8, 32 // out_itemsize)

    # ---- lane-dense spatial layout -----------------------------------------
    Hk, Wk, n_pad, mode = _spatial_layout(H, W)
    if mode != "direct":
        def relayout(x):
            x = x.reshape(B, 1, 1, H * W)
            if n_pad != H * W:
                x = jnp.pad(x, ((0, 0), (0, 0), (0, 0), (0, n_pad - H * W)))
            return x.reshape(B, 1, Hk, Wk)
        mindisp = relayout(mindisp)
        maxdisp = relayout(maxdisp)

    # ---- row tiling ----------------------------------------------------------
    if tile_h is None:
        tile_h = _choose_tile_h(Hk, Wk, S, B, out_itemsize,
                                target_bytes=target_block_bytes,
                                min_mult=min_mult)
    tile_h = min(int(tile_h), Hk)
    assert tile_h == Hk or tile_h % min_mult == 0, (
        f"tile_h must be a multiple of {min_mult} or the full row extent")

    grid = (B, pl.cdiv(Hk, tile_h))

    kernel = functools.partial(_uniform_sample_kernel, sample_count=S,
                               max_disp=float(max_disp), out_dtype=out_dtype)

    out = pl.pallas_call(
        kernel,
        out_shape=jax.ShapeDtypeStruct((B, S + 2, Hk, Wk), out_dtype),
        grid_spec=pltpu.PrefetchScalarGridSpec(
            num_scalar_prefetch=0,
            grid=grid,
            in_specs=[
                pl.BlockSpec((1, 1, tile_h, Wk), lambda b, h: (b, 0, h, 0)),
                pl.BlockSpec((1, 1, tile_h, Wk), lambda b, h: (b, 0, h, 0)),
            ],
            out_specs=pl.BlockSpec((1, S + 2, tile_h, Wk),
                                   lambda b, h: (b, 0, h, 0)),
        ),
        compiler_params=pltpu.CompilerParams(
            # Both axes parallel: batch AND row tiles can be sharded across the
            # two v7x TensorCores; every grid step is independent.
            dimension_semantics=("parallel", "parallel"),
            vmem_limit_bytes=vmem_limit_bytes,
        ),
    )(mindisp, maxdisp)

    if mode != "direct":
        out = out.reshape(B, S + 2, n_pad)[:, :, :H * W].reshape(B, S + 2, H, W)
    return out


def _reference(mindisp, maxdisp, sample_count, max_disp):
    # Same arithmetic formulation as the kernel (constant-reciprocal multiplies)
    # so the int-truncated results match exactly.
    mind1 = jnp.minimum(mindisp, maxdisp)
    maxd1 = jnp.maximum(mindisp, maxdisp)
    sc = float(sample_count)
    inv_sc1 = 1.0 / (sc + 1.0)
    min_disparity = jnp.clip(
        mind1 - jnp.maximum(sc - maxd1 + mind1, 0.0) * 0.5, 0.0, max_disp)
    max_disparity = jnp.clip(
        maxd1 + jnp.maximum(sc - maxd1 + min_disparity, 0.0), 0.0, max_disp)
    multiplier = (max_disparity - min_disparity) * inv_sc1
    rng = jnp.arange(1.0, sample_count + 1, 1.0,
                     dtype=jnp.float32).reshape(sample_count, 1, 1)
    sampled = min_disparity + multiplier * rng
    out = jnp.concatenate(
        [jnp.floor(min_disparity), sampled, jnp.ceil(max_disparity)], axis=1)
    return out.astype(jnp.int32)


if __name__ == "__main__":
    key = jax.random.PRNGKey(0)
    max_disp = 192.0

    cases = [
        # (B, H, W, sample_count, tile_h, out_dtype)
        (2, 16, 16, 8, None, jnp.int32),    # W<128, H*W%128==0 -> lane-dense repack
        (2, 16, 128, 6, None, jnp.int32),   # lane-aligned W, direct layout
        (1, 40, 128, 4, 8, jnp.int32),      # explicit multi-tile row grid
        (1, 20, 128, 4, None, jnp.int32),   # B=1 -> forced >=2 row tiles (megacore)
        (2, 15, 20, 5, None, jnp.int32),    # H*W%128!=0 -> pad to 128-mult, slice off
        (2, 16, 128, 6, None, jnp.int16),   # narrow writeback dtype (max_disp fits)
    ]

    for idx, (B, H, W, S, tile_h, odt) in enumerate(cases):
        k1, k2 = jax.random.split(jax.random.fold_in(key, idx))
        a = jax.random.uniform(k1, (B, 1, H, W), jnp.float32, 0.0, max_disp)
        b = jax.random.uniform(k2, (B, 1, H, W), jnp.float32, 0.0, max_disp)
        mindisp = jnp.minimum(a, b) * 0.8  # deterministic "coarse" bounds
        maxdisp = jnp.maximum(a, b)

        out = uniform_sample(mindisp, maxdisp, S, max_disp=max_disp,
                             tile_h=tile_h, out_dtype=odt)
        out = jax.block_until_ready(out)

        ref = _reference(mindisp, maxdisp, S, max_disp)
        assert out.shape == (B, S + 2, H, W), (out.shape, (B, S + 2, H, W))
        assert out.dtype == jnp.dtype(odt), (out.dtype, odt)
        assert jnp.array_equal(out.astype(jnp.int32), ref), (
            f"mismatch vs pure-JAX reference (case {idx})")

    print("KERNEL_OK")
</pallas_src>

<mosaic_0001>
module attributes {stable_mosaic.version = 11 : i64} {
  func.func @_uniform_sample_kernel(%arg0: i32, %arg1: i32, %arg2: memref<1x1x1x256xf32, #tpu.memory_space<vmem>>, %arg3: memref<1x1x1x256xf32, #tpu.memory_space<vmem>>, %arg4: memref<1x10x1x256xi32, #tpu.memory_space<vmem>>) attributes {dimension_semantics = [#tpu.dimension_semantics<parallel>, #tpu.dimension_semantics<parallel>], iteration_bounds = array<i64: 2, 1>, scalar_prefetch = 0 : i64, scratch_operands = 0 : i64, tpu.core_type = #tpu.core_type<tc>, window_params = [{transform_indices = @transform_0, window_bounds = array<i64: 1, 1, 1, 256>}, {transform_indices = @transform_1, window_bounds = array<i64: 1, 1, 1, 256>}, {transform_indices = @transform_2, window_bounds = array<i64: 1, 10, 1, 256>}]} {
    %c0 = arith.constant 0 : index
    %c0_0 = arith.constant 0 : index
    %c0_1 = arith.constant 0 : index
    %c0_2 = arith.constant 0 : index
    %0 = vector.load %arg2[%c0, %c0_0, %c0_1, %c0_2] : memref<1x1x1x256xf32, #tpu.memory_space<vmem>>, vector<1x1x1x256xf32>
    %1 = vector.shape_cast %0 : vector<1x1x1x256xf32> to vector<1x256xf32>
    %c0_3 = arith.constant 0 : index
    %c0_4 = arith.constant 0 : index
    %c0_5 = arith.constant 0 : index
    %c0_6 = arith.constant 0 : index
    %2 = vector.load %arg3[%c0_3, %c0_4, %c0_5, %c0_6] : memref<1x1x1x256xf32, #tpu.memory_space<vmem>>, vector<1x1x1x256xf32>
    %3 = vector.shape_cast %2 : vector<1x1x1x256xf32> to vector<1x256xf32>
    %4 = arith.minimumf %1, %3 : vector<1x256xf32>
    %5 = arith.maximumf %1, %3 : vector<1x256xf32>
    %cst = arith.constant 8.000000e+00 : f32
    %6 = vector.broadcast %cst : f32 to vector<1x256xf32>
    %7 = arith.subf %6, %5 : vector<1x256xf32>
    %8 = arith.addf %7, %4 : vector<1x256xf32>
    %cst_7 = arith.constant 0.000000e+00 : f32
    %9 = vector.broadcast %cst_7 : f32 to vector<1x256xf32>
    %10 = arith.maximumf %8, %9 : vector<1x256xf32>
    %cst_8 = arith.constant 5.000000e-01 : f32
    %11 = vector.broadcast %cst_8 : f32 to vector<1x256xf32>
    %12 = arith.mulf %10, %11 : vector<1x256xf32>
    %13 = arith.subf %4, %12 : vector<1x256xf32>
    %cst_9 = arith.constant 0.000000e+00 : f32
    %cst_10 = arith.constant 1.920000e+02 : f32
    %14 = vector.broadcast %cst_9 : f32 to vector<1x256xf32>
    %15 = arith.maximumf %14, %13 : vector<1x256xf32>
    %16 = vector.broadcast %cst_10 : f32 to vector<1x256xf32>
    %17 = arith.minimumf %16, %15 : vector<1x256xf32>
    %cst_11 = arith.constant 8.000000e+00 : f32
    %18 = vector.broadcast %cst_11 : f32 to vector<1x256xf32>
    %19 = arith.subf %18, %5 : vector<1x256xf32>
    %20 = arith.addf %19, %17 : vector<1x256xf32>
    %cst_12 = arith.constant 0.000000e+00 : f32
    %21 = vector.broadcast %cst_12 : f32 to vector<1x256xf32>
    %22 = arith.maximumf %20, %21 : vector<1x256xf32>
    %23 = arith.addf %5, %22 : vector<1x256xf32>
    %cst_13 = arith.constant 0.000000e+00 : f32
    %cst_14 = arith.constant 1.920000e+02 : f32
    %24 = vector.broadcast %cst_13 : f32 to vector<1x256xf32>
    %25 = arith.maximumf %24, %23 : vector<1x256xf32>
    %26 = vector.broadcast %cst_14 : f32 to vector<1x256xf32>
    %27 = arith.minimumf %26, %25 : vector<1x256xf32>
    %28 = arith.subf %27, %17 : vector<1x256xf32>
    %cst_15 = arith.constant 0.111111112 : f32
    %29 = vector.broadcast %cst_15 : f32 to vector<1x256xf32>
    %30 = arith.mulf %28, %29 : vector<1x256xf32>
    %31 = math.floor %17 : vector<1x256xf32>
    %32 = arith.fptosi %31 : vector<1x256xf32> to vector<1x256xi32>
    %c0_16 = arith.constant 0 : index
    %c0_17 = arith.constant 0 : index
    %c0_18 = arith.constant 0 : index
    %c0_19 = arith.constant 0 : index
    %33 = vector.load %arg4[%c0_16, %c0_17, %c0_18, %c0_19] : memref<1x10x1x256xi32, #tpu.memory_space<vmem>>, vector<1x1x1x256xi32>
    %34 = vector.shape_cast %33 : vector<1x1x1x256xi32> to vector<1x256xi32>
    %35 = vector.shape_cast %32 : vector<1x256xi32> to vector<1x1x1x256xi32>
    tpu.vector_store %arg4[%c0_16, %c0_17, %c0_18, %c0_19], %35 {strides = array<i32>} : memref<1x10x1x256xi32, #tpu.memory_space<vmem>>, vector<1x1x1x256xi32>,
    %cst_20 = arith.constant 1.000000e+00 : f32
    %36 = vector.broadcast %cst_20 : f32 to vector<1x256xf32>
    %37 = arith.mulf %30, %36 : vector<1x256xf32>
    %38 = arith.addf %17, %37 : vector<1x256xf32>
    %39 = arith.fptosi %38 : vector<1x256xf32> to vector<1x256xi32>
    %c0_21 = arith.constant 0 : index
    %c1 = arith.constant 1 : index
    %c0_22 = arith.constant 0 : index
    %c0_23 = arith.constant 0 : index
    %40 = vector.load %arg4[%c0_21, %c1, %c0_22, %c0_23] : memref<1x10x1x256xi32, #tpu.memory_space<vmem>>, vector<1x1x1x256xi32>
    %41 = vector.shape_cast %40 : vector<1x1x1x256xi32> to vector<1x256xi32>
    %42 = vector.shape_cast %39 : vector<1x256xi32> to vector<1x1x1x256xi32>
    tpu.vector_store %arg4[%c0_21, %c1, %c0_22, %c0_23], %42 {strides = array<i32>} : memref<1x10x1x256xi32, #tpu.memory_space<vmem>>, vector<1x1x1x256xi32>,
    %cst_24 = arith.constant 2.000000e+00 : f32
    %43 = vector.broadcast %cst_24 : f32 to vector<1x256xf32>
    %44 = arith.mulf %30, %43 : vector<1x256xf32>
    %45 = arith.addf %17, %44 : vector<1x256xf32>
    %46 = arith.fptosi %45 : vector<1x256xf32> to vector<1x256xi32>
    %c0_25 = arith.constant 0 : index
    %c2 = arith.constant 2 : index
    %c0_26 = arith.constant 0 : index
    %c0_27 = arith.constant 0 : index
    %47 = vector.load %arg4[%c0_25, %c2, %c0_26, %c0_27] : memref<1x10x1x256xi32, #tpu.memory_space<vmem>>, vector<1x1x1x256xi32>
    %48 = vector.shape_cast %47 : vector<1x1x1x256xi32> to vector<1x256xi32>
    %49 = vector.shape_cast %46 : vector<1x256xi32> to vector<1x1x1x256xi32>
    tpu.vector_store %arg4[%c0_25, %c2, %c0_26, %c0_27], %49 {strides = array<i32>} : memref<1x10x1x256xi32, #tpu.memory_space<vmem>>, vector<1x1x1x256xi32>,
    %cst_28 = arith.constant 3.000000e+00 : f32
    %50 = vector.broadcast %cst_28 : f32 to vector<1x256xf32>
    %51 = arith.mulf %30, %50 : vector<1x256xf32>
    %52 = arith.addf %17, %51 : vector<1x256xf32>
    %53 = arith.fptosi %52 : vector<1x256xf32> to vector<1x256xi32>
    %c0_29 = arith.constant 0 : index
    %c3 = arith.constant 3 : index
    %c0_30 = arith.constant 0 : index
    %c0_31 = arith.constant 0 : index
    %54 = vector.load %arg4[%c0_29, %c3, %c0_30, %c0_31] : memref<1x10x1x256xi32, #tpu.memory_space<vmem>>, vector<1x1x1x256xi32>
    %55 = vector.shape_cast %54 : vector<1x1x1x256xi32> to vector<1x256xi32>
    %56 = vector.shape_cast %53 : vector<1x256xi32> to vector<1x1x1x256xi32>
    tpu.vector_store %arg4[%c0_29, %c3, %c0_30, %c0_31], %56 {strides = array<i32>} : memref<1x10x1x256xi32, #tpu.memory_space<vmem>>, vector<1x1x1x256xi32>,
    %cst_32 = arith.constant 4.000000e+00 : f32
    %57 = vector.broadcast %cst_32 : f32 to vector<1x256xf32>
    %58 = arith.mulf %30, %57 : vector<1x256xf32>
    %59 = arith.addf %17, %58 : vector<1x256xf32>
    %60 = arith.fptosi %59 : vector<1x256xf32> to vector<1x256xi32>
    %c0_33 = arith.constant 0 : index
    %c4 = arith.constant 4 : index
    %c0_34 = arith.constant 0 : index
    %c0_35 = arith.constant 0 : index
    %61 = vector.load %arg4[%c0_33, %c4, %c0_34, %c0_35] : memref<1x10x1x256xi32, #tpu.memory_space<vmem>>, vector<1x1x1x256xi32>
    %62 = vector.shape_cast %61 : vector<1x1x1x256xi32> to vector<1x256xi32>
    %63 = vector.shape_cast %60 : vector<1x256xi32> to vector<1x1x1x256xi32>
    tpu.vector_store %arg4[%c0_33, %c4, %c0_34, %c0_35], %63 {strides = array<i32>} : memref<1x10x1x256xi32, #tpu.memory_space<vmem>>, vector<1x1x1x256xi32>,
    %cst_36 = arith.constant 5.000000e+00 : f32
    %64 = vector.broadcast %cst_36 : f32 to vector<1x256xf32>
    %65 = arith.mulf %30, %64 : vector<1x256xf32>
    %66 = arith.addf %17, %65 : vector<1x256xf32>
    %67 = arith.fptosi %66 : vector<1x256xf32> to vector<1x256xi32>
    %c0_37 = arith.constant 0 : index
    %c5 = arith.constant 5 : index
    %c0_38 = arith.constant 0 : index
    %c0_39 = arith.constant 0 : index
    %68 = vector.load %arg4[%c0_37, %c5, %c0_38, %c0_39] : memref<1x10x1x256xi32, #tpu.memory_space<vmem>>, vector<1x1x1x256xi32>
    %69 = vector.shape_cast %68 : vector<1x1x1x256xi32> to vector<1x256xi32>
    %70 = vector.shape_cast %67 : vector<1x256xi32> to vector<1x1x1x256xi32>
    tpu.vector_store %arg4[%c0_37, %c5, %c0_38, %c0_39], %70 {strides = array<i32>} : memref<1x10x1x256xi32, #tpu.memory_space<vmem>>, vector<1x1x1x256xi32>,
    %cst_40 = arith.constant 6.000000e+00 : f32
    %71 = vector.broadcast %cst_40 : f32 to vector<1x256xf32>
    %72 = arith.mulf %30, %71 : vector<1x256xf32>
    %73 = arith.addf %17, %72 : vector<1x256xf32>
    %74 = arith.fptosi %73 : vector<1x256xf32> to vector<1x256xi32>
    %c0_41 = arith.constant 0 : index
    %c6 = arith.constant 6 : index
    %c0_42 = arith.constant 0 : index
    %c0_43 = arith.constant 0 : index
    %75 = vector.load %arg4[%c0_41, %c6, %c0_42, %c0_43] : memref<1x10x1x256xi32, #tpu.memory_space<vmem>>, vector<1x1x1x256xi32>
    %76 = vector.shape_cast %75 : vector<1x1x1x256xi32> to vector<1x256xi32>
    %77 = vector.shape_cast %74 : vector<1x256xi32> to vector<1x1x1x256xi32>
    tpu.vector_store %arg4[%c0_41, %c6, %c0_42, %c0_43], %77 {strides = array<i32>} : memref<1x10x1x256xi32, #tpu.memory_space<vmem>>, vector<1x1x1x256xi32>,
    %cst_44 = arith.constant 7.000000e+00 : f32
    %78 = vector.broadcast %cst_44 : f32 to vector<1x256xf32>
    %79 = arith.mulf %30, %78 : vector<1x256xf32>
    %80 = arith.addf %17, %79 : vector<1x256xf32>
    %81 = arith.fptosi %80 : vector<1x256xf32> to vector<1x256xi32>
    %c0_45 = arith.constant 0 : index
    %c7 = arith.constant 7 : index
    %c0_46 = arith.constant 0 : index
    %c0_47 = arith.constant 0 : index
    %82 = vector.load %arg4[%c0_45, %c7, %c0_46, %c0_47] : memref<1x10x1x256xi32, #tpu.memory_space<vmem>>, vector<1x1x1x256xi32>
    %83 = vector.shape_cast %82 : vector<1x1x1x256xi32> to vector<1x256xi32>
    %84 = vector.shape_cast %81 : vector<1x256xi32> to vector<1x1x1x256xi32>
    tpu.vector_store %arg4[%c0_45, %c7, %c0_46, %c0_47], %84 {strides = array<i32>} : memref<1x10x1x256xi32, #tpu.memory_space<vmem>>, vector<1x1x1x256xi32>,
    %cst_48 = arith.constant 8.000000e+00 : f32
    %85 = vector.broadcast %cst_48 : f32 to vector<1x256xf32>
    %86 = arith.mulf %30, %85 : vector<1x256xf32>
    %87 = arith.addf %17, %86 : vector<1x256xf32>
    %88 = arith.fptosi %87 : vector<1x256xf32> to vector<1x256xi32>
    %c0_49 = arith.constant 0 : index
    %c8 = arith.constant 8 : index
    %c0_50 = arith.constant 0 : index
    %c0_51 = arith.constant 0 : index
    %89 = vector.load %arg4[%c0_49, %c8, %c0_50, %c0_51] : memref<1x10x1x256xi32, #tpu.memory_space<vmem>>, vector<1x1x1x256xi32>
    %90 = vector.shape_cast %89 : vector<1x1x1x256xi32> to vector<1x256xi32>
    %91 = vector.shape_cast %88 : vector<1x256xi32> to vector<1x1x1x256xi32>
    tpu.vector_store %arg4[%c0_49, %c8, %c0_50, %c0_51], %91 {strides = array<i32>} : memref<1x10x1x256xi32, #tpu.memory_space<vmem>>, vector<1x1x1x256xi32>,
    %92 = math.ceil %27 : vector<1x256xf32>
    %93 = arith.fptosi %92 : vector<1x256xf32> to vector<1x256xi32>
    %c0_52 = arith.constant 0 : index
    %c9 = arith.constant 9 : index
    %c0_53 = arith.constant 0 : index
    %c0_54 = arith.constant 0 : index
    %94 = vector.load %arg4[%c0_52, %c9, %c0_53, %c0_54] : memref<1x10x1x256xi32, #tpu.memory_space<vmem>>, vector<1x1x1x256xi32>
    %95 = vector.shape_cast %94 : vector<1x1x1x256xi32> to vector<1x256xi32>
    %96 = vector.shape_cast %93 : vector<1x256xi32> to vector<1x1x1x256xi32>
    tpu.vector_store %arg4[%c0_52, %c9, %c0_53, %c0_54], %96 {strides = array<i32>} : memref<1x10x1x256xi32, #tpu.memory_space<vmem>>, vector<1x1x1x256xi32>,
    return
  }
  func.func @transform_0(%arg0: i32, %arg1: i32) -> (i32, i32, i32, i32) {
    %c0_i32 = arith.constant 0 : i32
    %c0_i32_0 = arith.constant 0 : i32
    %c0_i32_1 = arith.constant 0 : i32
    return %arg0, %c0_i32, %arg1, %c0_i32_0 : i32, i32, i32, i32
  }
  func.func @transform_1(%arg0: i32, %arg1: i32) -> (i32, i32, i32, i32) {
    %c0_i32 = arith.constant 0 : i32
    %c0_i32_0 = arith.constant 0 : i32
    %c0_i32_1 = arith.constant 0 : i32
    return %arg0, %c0_i32, %arg1, %c0_i32_0 : i32, i32, i32, i32
  }
  func.func @transform_2(%arg0: i32, %arg1: i32) -> (i32, i32, i32, i32) {
    %c0_i32 = arith.constant 0 : i32
    %c0_i32_0 = arith.constant 0 : i32
    %c0_i32_1 = arith.constant 0 : i32
    return %arg0, %c0_i32, %arg1, %c0_i32_0 : i32, i32, i32, i32
  }
}

</mosaic_0001>

<bundles_post_ra>
// kernel: tpu_custom_call.1
= control target key start
LH: loop header
LB: loop body
LE: loop exit
PB: predicated region body
PF: predicated region fallthrough
CT: control target
= control target key end

     0   :  { %7 = vsyncpa [#allocation3], 0  ;;  %s963_s0 = inlined_call_operand.hbm [shape: f32[2,1,1,256], index: 0, kind: input, shape index: {}]   ;;  %s964_s1 = inlined_call_operand.hbm [shape: f32[2,1,1,256], index: 1, kind: input, shape index: {}]   ;;  %s965_s2 = inlined_call_operand.hbm [shape: s32[2,10,1,256], index: 2, kind: output, shape index: {}]  }
   0x1   :  { %9 = vsyncpa [#allocation3 + $0x1], 0 }
   0x2   :  { %10 = vsyncpa [#allocation6], 0 }
   0x3   :  { %12 = vsyncpa [#allocation6 + $0x1], 0 }
   0x4   :  { %13 = vsyncpa [#allocation4], 0 }
   0x5   :  { %15 = vsyncpa [#allocation4 + $0x1], 0  ;;  %s703_s9 = smov 0   ;;  %s705_s10 = smov 0  }
   0x6   :  { %s707_s11 = smov 0   ;;  %s709_s12 = smov 0  }
   0x7   :  { %s711_s13 = smov 0   ;;  %s713_s14 = smov 0  }
   0x8 LB: > { %s417_s15 = sadd.s32 4294967295, %s681_s14   ;;  %s418_s16 = sadd.s32 4294967294, %s681_s14   ;;  %s681_s14 = sphi %s713_s14, %s21_s14   ;;  %s677_s13 = sphi %s711_s13, %s987_s13   ;;  %s673_s12 = sphi %s709_s12, %s986_s12   ;;  %s669_s11 = sphi %s707_s11, %s985_s11   ;;  %s665_s10 = sphi %s705_s10, %s984_s10   ;;  %s661_s9 = sphi %s703_s9, %s983_s9  }
   0x9   : > { %s33_s17 = sadd.s32 1, %s677_s13  ;;  %s42_s18 = sadd.s32 1, %s669_s11 }
   0xa   : > { %p35_p0 = scmp.ge.s32.totalorder %s33_s17, 2  ;;  %p49_p1 = scmp.ne.s32.totalorder %s669_s11, %s665_s10 }
   0xb   : > { %p50_p2 = scmp.eq.s32.totalorder %s681_s14, 0  ;;  %p55_p3 = scmp.ne.s32.totalorder %s665_s10, %s661_s9 }
   0xc   : > { %s989_s17 = smov (%p35_p0, %s33_s17), 0  ;;  %p56_p5 = scmp.eq.s32.totalorder %s417_s15, 0 }
   0xd   : > { %p744_p4 = por %p50_p2, %p49_p1  ;;  %s37_s20 = ssub.s32 %s677_s13, %s989_s17 }
   0xe   : > { %p109_p6 = scmp.eq.s32.totalorder %s417_s15, 1  ;;  %p40_p7 = scmp.eq.s32.totalorder %s37_s20, 0 }
   0xf   : > { %p750_p8 = por %p56_p5, %p55_p3  ;;  %p115_p10 = scmp.eq.s32.totalorder %s418_s16, 1 }
  0x10   : > { %p754_p9 = por %p109_p6, %p49_p1  ;;  %p483_p13 = scmp.lt.s32.totalorder %s681_s14, 2 }
  0x11   : > { %s969_s21 = scalar_select %p750_p8, 1, 0 }
  0x12   : > { %s970_s22 = scalar_select %p754_p9, 1, 0 }
  0x13   : > { %s759_s23 = scalar_select %p40_p7, %s669_s11, %s42_s18  }
  0x14   : > { %p761_p11 = por %p115_p10, %p55_p3  ;;  %s768_s25 = sand.u32 1, %s669_s11  }
  0x15   : > { %s421_s26 = sshll.u32 %s768_s25, 1  ;;  %s442_s27 = sshll.u32 %s677_s13, 5 }
  0x16   : > { %s971_s24 = scalar_select %p761_p11, 1, 0 }
  0x17   : > { %s777_s30 = scalar_lea.hbm %s963_s0, %s442_s27  ;;  %s139_s3 = scalar_lea.vmem [#allocation2], %s421_s26 }
  0x18   : > { %s149_s4 = sshll.u32 %s139_s3, 4  ;;  %p785_p0 = pnand %p483_p13, %p744_p4  ;;  %s781_s4 = int_to_ptr.vmem [resolvable:$true] %s149_s4 }
  0x19   : > { %s136_s6 = scalar_lea.sflag [#allocation3], %s768_s25  ;;  %s535_s7 = scalar_lea.hbm %s777_s30, 32 }
  0x1a   : > { %p536_p3 = scmp.ne.s32.totalorder %s777_s30, %s535_s7  ;;  %p537_p5 = pneg %p785_p0 }
  0x1b   : > { %s540_s16 = scalar_lea.hbm %s963_s0, 64  ;;  %p541_p4 = scmp.lt.u32.totalorder %s777_s30, %s963_s0 }
  0x1c   : > { %p538_p6 = pnand %p537_p5, %p536_p3  ;;  %p542_p10 = scmp.lt.u32.totalorder %s540_s16, %s535_s7 }
  0x1d   : > { %p544_p12 = scmp.lt.u32.totalorder %s535_s7, %s777_s30 }
  0x1e   : > { %p539_p7 = pneg %p538_p6  ;;  %p543_p13 = por %p542_p10, %p541_p4 }
  0x20   : > { %p545_p1 = por %p544_p12, %p543_p13 }
  0x22   : > { %p546_p2 = pnand %p545_p1, %p539_p7 }
  0x24   : > { %549 = shalt.err (!%p546_p2)
}
  0x25   : > { %s550_s20 = scalar_lea.vmem %s781_s4, 32  ;;  %s683_s28 = smov [#allocation2]  }
  0x26   : > { %p551_p3 = scmp.ne.s32.totalorder %s781_s4, %s550_s20  ;;  %s555_s29 = sshll.u32 %s683_s28, 4  ;;  %s556_s29 = int_to_ptr.vmem [resolvable:$false] %s555_s29 }
  0x27   : > { %s557_s3 = scalar_lea.vmem %s556_s29, 64  ;;  %p558_p9 = scmp.lt.s32.totalorder %s781_s4, %s556_s29 }
  0x28   : > { %p553_p6 = pnand %p551_p3, %p537_p5  ;;  %p559_p4 = scmp.lt.s32.totalorder %s557_s3, %s550_s20 }
  0x2a   : > { %p554_p11 = pneg %p553_p6  ;;  %p560_p10 = por %p559_p4, %p558_p9 }
  0x2c   : > { %p561_p12 = pnand %p560_p10, %p554_p11 }
  0x2e   : > { %564 = shalt.err (!%p561_p12)
}
  0x2f   : > { %475 = dma.hbm_to_vmem [thread:$0]  (!%p785_p0), %s777_s30, 32, %s781_s4, %s136_s6  }
  0x30   : > { %p973_p1 = scmp.lt.s32.totalorder %s681_s14, 3  ;;  %p974_p2 = scmp.ge.s32.totalorder %s681_s14, 1 }
  0x31   : > { %s830_s16 = scalar_lea.hbm %s964_s1, %s442_s27  ;;  %s160_s18 = scalar_lea.vmem [#allocation5], %s421_s26 }
  0x32   : > { %p821_p7 = pnand %p974_p2, %p973_p1  ;;  %s170_s19 = sshll.u32 %s160_s18, 4  ;;  %s171_s19 = int_to_ptr.vmem [resolvable:$true] %s170_s19 }
  0x33   : > { %s157_s30 = scalar_lea.sflag [#allocation6], %s768_s25  ;;  %s565_s4 = scalar_lea.hbm %s830_s16, 32 }
  0x34   : > { %s975_s7 = scalar_select %p821_p7, 1, 0 }
  0x35   : > { %p566_p9 = scmp.ne.s32.totalorder %s830_s16, %s565_s4  ;;  %s570_s27 = scalar_lea.hbm %s964_s1, 64 }
  0x36   : > { %p571_p3 = scmp.lt.u32.totalorder %s830_s16, %s964_s1  ;;  %p572_p6 = scmp.lt.u32.totalorder %s570_s27, %s565_s4 }
  0x37   : > { %p568_p11 = pnand %p566_p9, %p537_p5  ;;  %p574_p10 = scmp.lt.u32.totalorder %s565_s4, %s830_s16 }
  0x38   : > { %p573_p4 = por %p572_p6, %p571_p3 }
  0x39   : > { %p569_p13 = pneg %p568_p11 }
  0x3a   : > { %p575_p12 = por %p574_p10, %p573_p4 }
  0x3c   : > { %p576_p1 = pnand %p575_p12, %p569_p13 }
  0x3e   : > { %579 = shalt.err (!%p576_p1)
}
  0x3f   : > { %s580_s25 = scalar_lea.vmem %s171_s19, 32  ;;  %s684_s26 = smov [#allocation5]  }
  0x40   : > { %p581_p2 = scmp.ne.s32.totalorder %s171_s19, %s580_s25  ;;  %s585_s3 = sshll.u32 %s684_s26, 4  ;;  %s586_s3 = int_to_ptr.vmem [resolvable:$false] %s585_s3 }
  0x41   : > { %s587_s8 = scalar_lea.vmem %s586_s3, 64  ;;  %p588_p8 = scmp.lt.s32.totalorder %s171_s19, %s586_s3 }
  0x42   : > { %p583_p9 = pnand %p581_p2, %p537_p5  ;;  %p589_p7 = scmp.lt.s32.totalorder %s587_s8, %s580_s25 }
  0x44   : > { %p584_p11 = pneg %p583_p9  ;;  %p590_p3 = por %p589_p7, %p588_p8 }
  0x46   : > { %p591_p6 = pnand %p590_p3, %p584_p11 }
  0x48   : > { %594 = shalt.err (!%p591_p6)
}
  0x49   : > { %478 = dma.hbm_to_vmem [thread:$0]  (!%p785_p0), %s830_s16, 32, %s171_s19, %s157_s30  }
  0x4a   : > { %p976_p13 = scmp.ne.s32.totalorder %s975_s7, 0 }
  0x4b   : > { %s857_s15 = sand.u32 (!%p976_p13), 1, %s665_s10   ;;  %p977_p5 = scmp.ne.s32.totalorder (!%p976_p13), %s969_s21, 0 }
  0x4c   : > { %179 = sbr.rel (%p976_p13) target bundleno = 143 (0x8f), region = 28  ;;  %s428_s18 = sshll.u32 (!%p976_p13), %s857_s15, 1 }
  0x4d   : > { %s182_s4 = scalar_lea.sflag (!%p976_p13), [#allocation3], %s857_s15  ;;  %s185_s6 = scalar_lea.vmem (!%p976_p13), [#allocation2], %s428_s18 }
  0x53   : > { %648 = dma.done.wait (%p977_p5), %s182_s4, 32  }
  0x54   : > { %650 = vsyncadd (%p977_p5), %s182_s4, 4294967264  ;;  %s191_s5 = scalar_lea.sflag [#allocation6], %s857_s15  ;;  %s194_s16 = scalar_lea.vmem [#allocation5], %s428_s18 }
  0x55   : > { %652 = dma.done.wait (%p977_p5), %s191_s5, 32  }
  0x56   : > { %654 = vsyncadd (%p977_p5), %s191_s5, 4294967264  ;;  %v220_v0 = vld [vmem:[%s185_s6] sm:$0x3]  ;;  %v221_v1 = vld [vmem:[%s194_s16] sm:$0x3]  ;;  %s444_s7 = smul.u32 20, %s857_s15  ;;  %v240_v11 = vlaneseq }
  0x57   : > { %v222_v2 = vmin.f32 %v220_v0, %v221_v1  ;;  %v223_v3 = vmax.f32 %v220_v0, %v221_v1  ;;  %s465_s19 = smul.u32 320, %s673_s12  ;;  %s289_s28 = scalar_lea.sflag [#allocation4], %s857_s15 }
  0x58   : > { %vm871_vm0 = vcmp.lt.s32.totalorder %v240_v11, 256  ;;  %s875_s21 = scalar_lea.vmem [#allocation7], %s444_s7  ;;  %p980_p0 = scmp.ne.s32.totalorder %s970_s22, 0 }
  0x59   : > { %v224_v4 = vsub.f32 8.0, %v223_v3  ;;  %s304_s30 = sshll.u32 %s875_s21, 4  ;;  %s890_s27 = scalar_lea.hbm %s965_s2, %s465_s19  ;;  %s885_s30 = int_to_ptr.vmem [resolvable:$true] %s304_s30 }
  0x5a   : > { %s595_s29 = scalar_lea.vmem %s885_s30, 320  ;;  %s685_s25 = smov [#allocation7]  }
  0x5b   : > { %v225_v5 = vadd.f32 %v224_v4, %v222_v2  ;;  %p596_p8 = scmp.ne.s32.totalorder %s885_s30, %s595_s29  ;;  %s599_s26 = sshll.u32 %s685_s25, 4  ;;  %s600_s26 = int_to_ptr.vmem [resolvable:$false] %s599_s26 }
  0x5c   : > { %s601_s3 = scalar_lea.vmem %s600_s26, 640  ;;  %p602_p10 = scmp.lt.s32.totalorder %s885_s30, %s600_s26 }
  0x5d   : > { %v226_v6 = vmax.f32 %v225_v5, 0.0  ;;  %p597_p7 = pnand %p596_p8, %p980_p0  ;;  %p603_p12 = scmp.lt.s32.totalorder %s601_s3, %s595_s29 }
  0x5f   : > { %v227_v7 = vmul.f32 0.5, %v226_v6  ;;  %p598_p4 = pneg %p597_p7  ;;  %p604_p1 = por %p603_p12, %p602_p10 }
  0x61   : > { %v228_v8 = vsub.f32 %v222_v2, %v227_v7  ;;  %p605_p2 = pnand %p604_p1, %p598_p4 }
  0x63   : > { %v229_v9 = vmax.f32 %v228_v8, 0.0 }
  0x65   : > { %v230_v10 = vmin.f32 %v229_v9, 192.0 }
  0x67   : > { %v238_v12 = vfloor.f32 %v230_v10  ;;  %v231_v13 = vadd.f32 %v230_v10, %v224_v4 }
  0x69   : > { %v445_v14 = vtrunc.f32 %v238_v12  ;;  %v232_v15 = vmax.f32 %v231_v13, 0.0 }
  0x6b   : > { %v446_v17 = vcvt.f32.s32 %v445_v14  ;;  %v233_v18 = vadd.f32 %v232_v15, %v223_v3 }
  0x6d   : > { %244 = vst.msk [vmem:[%s875_s21] sm:$0x3] %vm871_vm0, %v446_v17  ;;  %v234_v19 = vmax.f32 %v233_v18, 0.0 }
  0x6f   : > { %v235_v20 = vmin.f32 %v234_v19, 192.0 }
  0x71   : > { %v236_v21 = vsub.f32 %v235_v20, %v230_v10  ;;  %v284_v22 = vceil.f32 %v235_v20 }
  0x73   : > { %v237_v23 = vmul.f32 0.11111111, %v236_v21  ;;  %v463_v24 = vtrunc.f32 %v284_v22 }
  0x75   : > { %v245_v25 = vadd.f32 %v237_v23, %v230_v10  ;;  %v249_v26 = vmul.f32 2.0, %v237_v23  ;;  %v254_v27 = vmul.f32 3.0, %v237_v23  ;;  %v259_v28 = vmul.f32 4.0, %v237_v23 }
  0x76   : > { %v264_v29 = vmul.f32 5.0, %v237_v23  ;;  %v269_v30 = vmul.f32 6.0, %v237_v23  ;;  %v274_v31 = vmul.f32 7.0, %v237_v23  ;;  %v279_v32 = vmul.f32 8.0, %v237_v23 }
  0x77   : > { %v447_v33 = vtrunc.f32 %v245_v25  ;;  %v250_v34 = vadd.f32 %v249_v26, %v230_v10  ;;  %v255_v35 = vadd.f32 %v254_v27, %v230_v10  ;;  %v260_v36 = vadd.f32 %v259_v28, %v230_v10 }
  0x78   : > { %v265_v37 = vadd.f32 %v264_v29, %v230_v10  ;;  %v270_v38 = vadd.f32 %v269_v30, %v230_v10  ;;  %v275_v39 = vadd.f32 %v274_v31, %v230_v10  ;;  %v280_v40 = vadd.f32 %v279_v32, %v230_v10 }
  0x79   : > { %v448_v41 = vcvt.f32.s32 %v447_v33  ;;  %v449_v42 = vtrunc.f32 %v250_v34  ;;  %v451_v43 = vtrunc.f32 %v255_v35  ;;  %v453_v44 = vtrunc.f32 %v260_v36 }
  0x7a   : > { %v455_v45 = vtrunc.f32 %v265_v37  ;;  %v457_v46 = vtrunc.f32 %v270_v38  ;;  %v459_v47 = vtrunc.f32 %v275_v39  ;;  %v461_v48 = vtrunc.f32 %v280_v40 }
  0x7b   : > { %430 = vst.msk [vmem:[%s875_s21 + $0x2] sm:$0x3] %vm871_vm0, %v448_v41  ;;  %v450_v49 = vcvt.f32.s32 %v449_v42  ;;  %v452_v50 = vcvt.f32.s32 %v451_v43  ;;  %v454_v51 = vcvt.f32.s32 %v453_v44  ;;  %v464_v52 = vcvt.f32.s32 %v463_v24 }
  0x7c   : > { %v456_v53 = vcvt.f32.s32 %v455_v45  ;;  %v458_v54 = vcvt.f32.s32 %v457_v46  ;;  %v460_v55 = vcvt.f32.s32 %v459_v47  ;;  %v462_v56 = vcvt.f32.s32 %v461_v48 }
  0x7d   : > { %431 = vst.msk [vmem:[%s875_s21 + $0x4] sm:$0x3] %vm871_vm0, %v450_v49  ;;  %432 = vst.msk [vmem:[%s875_s21 + $0x6] sm:$0x3] %vm871_vm0, %v452_v50 }
  0x7e   : > { %433 = vst.msk [vmem:[%s875_s21 + $0x8] sm:$0x3] %vm871_vm0, %v454_v51  ;;  %438 = vst.msk [vmem:[%s875_s21 + $0x12] sm:$0x3] %vm871_vm0, %v464_v52 }
  0x7f   : > { %434 = vst.msk [vmem:[%s875_s21 + $0xa] sm:$0x3] %vm871_vm0, %v456_v53  ;;  %435 = vst.msk [vmem:[%s875_s21 + $0xc] sm:$0x3] %vm871_vm0, %v458_v54 }
  0x80   : > { %436 = vst.msk [vmem:[%s875_s21 + $0xe] sm:$0x3] %vm871_vm0, %v460_v55  ;;  %437 = vst.msk [vmem:[%s875_s21 + $0x10] sm:$0x3] %vm871_vm0, %v462_v56 }
  0x81   : > { %608 = shalt.err (!%p605_p2)
}
  0x82   : > { %s609_s8 = scalar_lea.hbm %s890_s27, 320  ;;  %s613_s6 = scalar_lea.hbm %s965_s2, 640 }
  0x83   : > { %p610_p9 = scmp.ne.s32.totalorder %s890_s27, %s609_s8  ;;  %p614_p6 = scmp.lt.u32.totalorder %s890_s27, %s965_s2 }
  0x84   : > { %p615_p13 = scmp.lt.u32.totalorder %s613_s6, %s609_s8  ;;  %p617_p8 = scmp.lt.u32.totalorder %s609_s8, %s890_s27 }
  0x85   : > { %p611_p11 = pnand %p610_p9, %p980_p0 }
  0x86   : > { %p616_p5 = por %p615_p13, %p614_p6 }
  0x87   : > { %p612_p3 = pneg %p611_p11 }
  0x88   : > { %p618_p7 = por %p617_p8, %p616_p5 }
  0x8a   : > { %p619_p4 = pnand %p618_p7, %p612_p3 }
  0x8c   : > { %622 = shalt.err (!%p619_p4)
}
  0x8d   : > { %s686_s7 = smov 32   ;;  %s687_s21 = smov 2  }
  0x8e   : > { %470 = dma.vmem_to_hbm [thread:$0]  (%p980_p0), %s885_s30, 320, %s890_s27, %s289_s28, %s686_s7, %s686_s7, %s687_s21  }
  0x8f PF: > { %s319_s19 = sand.u32 1, %s661_s9   ;;  %p981_p10 = scmp.ne.s32.totalorder %s971_s24, 0 }
  0x90   : > { %p982_p12 = scmp.ge.s32.totalorder %s681_s14, 2  ;;  %s320_s12 = scalar_lea.sflag [#allocation4], %s319_s19 }
  0x92   : > { %p480_p1 = pnand %p982_p12, %p981_p10 }
  0x94   : > { %656 = dma.done.wait (!%p480_p1), %s320_s12, 320  }
  0x95   : > { %658 = vsyncadd (!%p480_p1), %s320_s12, 4294966976  ;;  %s21_s14 = sadd.s32 1, %s681_s14   ;;  %s983_s9 = smov %s665_s10 }
  0x96   : > { %p18_p2 = scmp.ge.s32.totalorder %s21_s14, 4   ;;  %s984_s10 = smov %s669_s11 }
  0x97   : > { %s985_s11 = smov %s759_s23  ;;  %s986_s12 = smov %s677_s13 }
  0x98   : > { %s987_s13 = smov %s989_s17  ;;  %20 = sbr.rel (!%p18_p2) target bundleno = 8 (0x8), region = 95 }
  0x9f   :  { %325 = vsyncpa [#allocation3], 1 }
  0xa0   :  { %327 = vsyncpa [#allocation3 + $0x1], 1 }
  0xa1   :  { %328 = vsyncpa [#allocation6], 1 }
  0xa2   :  { %330 = vsyncpa [#allocation6 + $0x1], 1 }
  0xa3   :  { %331 = vsyncpa [#allocation4], 1 }
  0xa4   :  { %333 = vsyncpa [#allocation4 + $0x1], 1 }

</bundles_post_ra>
